<compile_context>
chip_gen: v5e
topology: v5e:2x2
jax: 0.10.0
libtpu: 0.0.40
codegen_flags: <defaults>
</compile_context>

<pallas_src>
import jax
import jax.numpy as jnp
from jax.experimental import pallas as pl
from jax.experimental.pallas import tpu as pltpu


def _round_up(x, m):
    return (x + m - 1) // m * m


def _on_v7x():
    try:
        kind = jax.devices()[0].device_kind.lower()
    except Exception:
        return False
    return "v7" in kind


def _conv_gemm_tanh_kernel(w_ref, a_ref, b_ref, o_ref):
    # w_ref: (Cout, K)   flattened conv weight (resident across the grid)
    # a_ref: (K, TL)     im2col patch tile; K on sublanes, TL on lanes
    # b_ref: (Cout, 1)   bias (f32)
    # o_ref: (Cout, TL)  lane-dense output tile (full-width unmasked stores)
    acc = jnp.dot(w_ref[...], a_ref[...], preferred_element_type=jnp.float32)
    acc = acc + b_ref[...]                           # VPU broadcast add
    o_ref[...] = jnp.tanh(acc).astype(o_ref.dtype)   # tanh on EUP


def conv2d_tanh_pallas(x_nchw, weight, bias, *, stride=2, padding=1,
                       tm_max=2048, operand_dtype=None):
    """x_nchw: (N, Cin, H, W); weight: (Cout, Cin, KH, KW); bias: (Cout,)."""
    N, Cin, H, W = x_nchw.shape
    Cout, _, KH, KW = weight.shape

    Ho = (H + 2 * padding - KH) // stride + 1
    Wo = (W + 2 * padding - KW) // stride + 1
    L = Ho * Wo                       # lane axis of the GEMM (per batch element)
    K = KH * KW * Cin                 # contraction axis (144 -> 18 f32 sublanes)

    out_dtype = x_nchw.dtype
    if operand_dtype is None:
        operand_dtype = x_nchw.dtype

    # ---- glue: pad NCHW, slice shifted windows, stack -> (N, K, L) -----------
    # No NHWC transpose and no moveaxis of the patch tensor: the stack axis +
    # contiguous reshape give the (K, L) layout directly per batch element.
    x = x_nchw.astype(operand_dtype)
    xp = jnp.pad(x, ((0, 0), (0, 0), (padding, padding), (padding, padding)))
    patches = []
    for kh in range(KH):
        for kw in range(KW):
            patches.append(
                xp[:, :, kh:kh + stride * Ho:stride, kw:kw + stride * Wo:stride]
            )                                           # (N, Cin, Ho, Wo)
    A = jnp.stack(patches, axis=1).reshape(N, K, L)     # k-order = (kh, kw, cin)

    # weight (Cout, Cin, KH, KW) -> (Cout, KH, KW, Cin) -> (Cout, K); ~18 KB.
    W2 = jnp.transpose(weight, (0, 2, 3, 1)).reshape(Cout, K).astype(operand_dtype)
    b2 = bias.reshape(Cout, 1).astype(jnp.float32)

    # ---- tile selection -------------------------------------------------------
    # v5e/v6e: one TensorCore -> fewest grid steps (tl = full L when it fits).
    # v7x: ensure >= 2 total grid steps so both TensorCores get work.
    # TODO(synk): on v7x, verify with xprof that "parallel" shards steps across
    # both TCs; switch to pltpu.CORE_PARALLEL / pl.core_map if it does not.
    tl = _round_up(L, 128)
    if _on_v7x() and N == 1:
        tl = max(128, _round_up(pl.cdiv(L, 2), 128))
    tl = min(tl, tm_max)
    Lp = _round_up(L, tl)
    if Lp > L:
        A = jnp.pad(A, ((0, 0), (0, 0), (0, Lp - L)))

    grid_spec = pltpu.PrefetchScalarGridSpec(
        num_scalar_prefetch=0,
        grid=(N, Lp // tl),
        in_specs=[
            pl.BlockSpec((Cout, K), lambda n, j: (0, 0)),         # weight, resident
            pl.BlockSpec((None, K, tl), lambda n, j: (n, 0, j)),  # patch tile
            pl.BlockSpec((Cout, 1), lambda n, j: (0, 0)),         # bias, resident
        ],
        out_specs=pl.BlockSpec((None, Cout, tl), lambda n, j: (n, 0, j)),
    )

    out = pl.pallas_call(
        _conv_gemm_tanh_kernel,
        out_shape=jax.ShapeDtypeStruct((N, Cout, Lp), out_dtype),
        grid_spec=grid_spec,
        compiler_params=pltpu.CompilerParams(
            dimension_semantics=("parallel", "parallel"),
            # Explicit scoped-VMEM budget; even at tl=2048 the double-buffered
            # footprint is only a few MB, well under this on v5e/v6e/v7x.
            vmem_limit_bytes=32 * 1024 * 1024,
        ),
    )(W2, A, b2)

    # (N, Cout, Lp) -> (N, Cout, Ho, Wo): slice lane pad, free reshape;
    # already NCHW, no output transpose.
    return out[:, :, :L].reshape(N, Cout, Ho, Wo)


if __name__ == "__main__":
    key = jax.random.PRNGKey(0)
    kx, kw, kb = jax.random.split(key, 3)

    # Small shapes consistent with the module: Cin=16 / Cout=32 fixed by Conv2d(16, 32, 3).
    N, Cin, H, W = 2, 16, 32, 32
    Cout, KH, KW = 32, 3, 3

    x = jax.random.normal(kx, (N, Cin, H, W), dtype=jnp.float32)
    weight = jax.random.normal(kw, (Cout, Cin, KH, KW), dtype=jnp.float32) * 0.1
    bias = jax.random.normal(kb, (Cout,), dtype=jnp.float32) * 0.1

    # Reference: XLA conv + tanh (default precision, same as the kernel's dot).
    ref = jax.lax.conv_general_dilated(
        x, weight,
        window_strides=(2, 2),
        padding=((1, 1), (1, 1)),
        dimension_numbers=("NCHW", "OIHW", "NCHW"),
    ) + bias.reshape(1, Cout, 1, 1)
    ref = jnp.tanh(ref)

    # Default f32-operand path: must hold the 1e-4 reference check.
    out = jax.block_until_ready(conv2d_tanh_pallas(x, weight, bias))
    assert out.shape == (N, Cout, H // 2, W // 2), out.shape
    assert jnp.allclose(out, ref, rtol=1e-4, atol=1e-4), "f32 mismatch vs reference"

    # bf16-operand path (halves DMA bytes, f32 MXU accumulation) under a
    # tolerance consistent with bf16 operand rounding.
    out_bf16 = jax.block_until_ready(
        conv2d_tanh_pallas(x, weight, bias, operand_dtype=jnp.bfloat16))
    assert out_bf16.shape == out.shape
    assert jnp.allclose(out_bf16, ref, rtol=2e-2, atol=2e-2), "bf16 mismatch vs reference"

    print("KERNEL_OK")
</pallas_src>

<mosaic_0001>
module attributes {stable_mosaic.version = 11 : i64} {
  func.func @_conv_gemm_tanh_kernel(%arg0: i32, %arg1: i32, %arg2: memref<32x144xf32, #tpu.memory_space<vmem>>, %arg3: memref<1x144x256xf32, #tpu.memory_space<vmem>>, %arg4: memref<32x1xf32, #tpu.memory_space<vmem>>, %arg5: memref<1x32x256xf32, #tpu.memory_space<vmem>>) attributes {dimension_semantics = [#tpu.dimension_semantics<parallel>, #tpu.dimension_semantics<parallel>], iteration_bounds = array<i64: 2, 1>, scalar_prefetch = 0 : i64, scratch_operands = 0 : i64, tpu.core_type = #tpu.core_type<tc>, window_params = [{pipeline_mode = #tpu.pipeline_mode<synchronous>, transform_indices = @transform_0, window_bounds = array<i64: 32, 144>}, {transform_indices = @transform_1, window_bounds = array<i64: 1, 144, 256>}, {pipeline_mode = #tpu.pipeline_mode<synchronous>, transform_indices = @transform_2, window_bounds = array<i64: 32, 1>}, {transform_indices = @transform_3, window_bounds = array<i64: 1, 32, 256>}]} {
    %c0 = arith.constant 0 : index
    %c0_0 = arith.constant 0 : index
    %0 = vector.load %arg2[%c0, %c0_0] : memref<32x144xf32, #tpu.memory_space<vmem>>, vector<32x144xf32>
    %c0_1 = arith.constant 0 : index
    %c0_2 = arith.constant 0 : index
    %c0_3 = arith.constant 0 : index
    %1 = vector.load %arg3[%c0_1, %c0_2, %c0_3] : memref<1x144x256xf32, #tpu.memory_space<vmem>>, vector<1x144x256xf32>
    %2 = vector.shape_cast %1 : vector<1x144x256xf32> to vector<144x256xf32>
    %cst = arith.constant dense<0.000000e+00> : vector<32x256xf32>
    %3 = tpu.matmul %0, %2, %cst {dimension_numbers = #tpu.dot_dimension_numbers<[1], [0], [0], [1], [0, 0, 1, 1], [], []>} : vector<32x144xf32>, vector<144x256xf32>, vector<32x256xf32> -> vector<32x256xf32>
    %c0_4 = arith.constant 0 : index
    %c0_5 = arith.constant 0 : index
    %4 = vector.load %arg4[%c0_4, %c0_5] : memref<32x1xf32, #tpu.memory_space<vmem>>, vector<32x1xf32>
    %5 = vector.broadcast %4 : vector<32x1xf32> to vector<32x256xf32>
    %6 = arith.addf %3, %5 : vector<32x256xf32>
    %7 = math.tanh %6 : vector<32x256xf32>
    %c0_6 = arith.constant 0 : index
    %c0_7 = arith.constant 0 : index
    %c0_8 = arith.constant 0 : index
    %8 = vector.load %arg5[%c0_6, %c0_7, %c0_8] : memref<1x32x256xf32, #tpu.memory_space<vmem>>, vector<1x32x256xf32>
    %9 = vector.shape_cast %8 : vector<1x32x256xf32> to vector<32x256xf32>
    %10 = vector.shape_cast %7 : vector<32x256xf32> to vector<1x32x256xf32>
    tpu.vector_store %arg5[%c0_6, %c0_7, %c0_8], %10 {strides = array<i32>} : memref<1x32x256xf32, #tpu.memory_space<vmem>>, vector<1x32x256xf32>,
    return
  }
  func.func @transform_0(%arg0: i32, %arg1: i32) -> (i32, i32) {
    %c0_i32 = arith.constant 0 : i32
    %c0_i32_0 = arith.constant 0 : i32
    %c0_i32_1 = arith.constant 0 : i32
    return %c0_i32, %c0_i32_0 : i32, i32
  }
  func.func @transform_1(%arg0: i32, %arg1: i32) -> (i32, i32, i32) {
    %c0_i32 = arith.constant 0 : i32
    %c0_i32_0 = arith.constant 0 : i32
    return %arg0, %c0_i32, %arg1 : i32, i32, i32
  }
  func.func @transform_2(%arg0: i32, %arg1: i32) -> (i32, i32) {
    %c0_i32 = arith.constant 0 : i32
    %c0_i32_0 = arith.constant 0 : i32
    %c0_i32_1 = arith.constant 0 : i32
    return %c0_i32, %c0_i32_0 : i32, i32
  }
  func.func @transform_3(%arg0: i32, %arg1: i32) -> (i32, i32, i32) {
    %c0_i32 = arith.constant 0 : i32
    %c0_i32_0 = arith.constant 0 : i32
    return %arg0, %c0_i32, %arg1 : i32, i32, i32
  }
}

</mosaic_0001>

<bundles_post_ra>
// kernel: tpu_custom_call.1
= control target key start
LH: loop header
LB: loop body
LE: loop exit
PB: predicated region body
PF: predicated region fallthrough
CT: control target
= control target key end

     0   :  { %8 = vsyncpa [#allocation3], 0  ;;  %s1073_s0 = inlined_call_operand.hbm [shape: f32[32,144], index: 0, kind: input, shape index: {}]   ;;  %s1074_s1 = inlined_call_operand.hbm [shape: f32[2,144,256], index: 1, kind: input, shape index: {}]   ;;  %s1075_s2 = inlined_call_operand.vmem [shape: f32[32,1], index: 2, kind: input, shape index: {}]   ;;  %s1076_s3 = inlined_call_operand.hbm [shape: f32[2,32,256], index: 3, kind: output, shape index: {}]  }
   0x1   :  { %9 = vsyncpa [#allocation6], 0 }
   0x2   :  { %11 = vsyncpa [#allocation6 + $0x1], 0 }
   0x3   :  { %12 = vsyncpa [#allocation4], 0 }
   0x4   :  { %14 = vsyncpa [#allocation4 + $0x1], 0  ;;  %s854_s12 = smov 0   ;;  %s856_s13 = smov 0  }
   0x5   :  { %s858_s14 = smov 0   ;;  %s860_s15 = smov 0  }
   0x6   :  { %s862_s16 = smov 0   ;;  %s864_s17 = smov 0  }
   0x7 LB: > { %s558_s18 = sadd.s32 4294967295, %s826_s17   ;;  %s559_s19 = sadd.s32 4294967294, %s826_s17   ;;  %s826_s17 = sphi %s864_s17, %s20_s17   ;;  %s822_s16 = sphi %s862_s16, %s1087_s16   ;;  %s818_s15 = sphi %s860_s15, %s1086_s15   ;;  %s814_s14 = sphi %s858_s14, %s1085_s14   ;;  %s810_s13 = sphi %s856_s13, %s1084_s13   ;;  %s806_s12 = sphi %s854_s12, %s1083_s12  }
   0x8   : > { %p75_p0 = scmp.ne.s32.totalorder %s810_s13, %s806_s12  ;;  %p888_p1 = scmp.eq.s32.totalorder %s558_s18, 0 }
   0x9   : > { %p892_p2 = scmp.eq.s32.totalorder %s558_s18, 1  ;;  %p128_p3 = scmp.eq.s32.totalorder %s559_s19, 1 }
   0xa   : > { %p898_p4 = por %p888_p1, %p75_p0  ;;  %p560_p5 = scmp.ge.s32.totalorder %s826_s17, 1 }
   0xb   : > { %p903_p6 = por %p128_p3, %p75_p0  ;;  %p135_p7 = scmp.lt.s32.totalorder %s826_s17, 3 }
   0xc   : > { %s146_s26 = sshll.u32 %s1073_s0, 4  ;;  %s828_s28 = smov [#allocation2]   ;;  %s147_s26 = int_to_ptr.hbm [resolvable:$true] %s146_s26 }
   0xd   : > { %p911_p8 = pnand %p560_p5, %p135_p7  ;;  %s148_s29 = sshll.u32 %s828_s28, 4  ;;  %s149_s29 = int_to_ptr.vmem [resolvable:$true] %s148_s29 }
   0xe   : > { %p562_p11 = scmp.ge.s32.totalorder %s826_s17, 2  ;;  %s829_s30 = smov 256  }
   0xf   : > { %p592_p9 = pneg %p911_p8  ;;  %s830_s4 = smov 16  }
  0x10   : > { %s32_s5 = sadd.s32 1, %s822_s16  ;;  %s62_s6 = sadd.s32 1, %s814_s14 }
  0x11   : > { %p593_p10 = pnand %p592_p9, %p888_p1  ;;  %p34_p12 = scmp.ge.s32.totalorder %s32_s5, 2 }
  0x12   : > { %p69_p13 = scmp.ne.s32.totalorder %s814_s14, %s810_s13  ;;  %p70_p0 = scmp.eq.s32.totalorder %s826_s17, 0 }
  0x13   : > { %595 = dma.hbm_to_vmem [thread:$0]  (!%p593_p10), %s147_s26, 1024, %s149_s29, [#allocation3], %s829_s30, %s829_s30, %s830_s4  }
  0x14   : > { %s1089_s5 = smov (%p34_p12, %s32_s5), 0  ;;  %p71_p3 = por %p70_p0, %p69_p13 }
  0x15   : > { %p932_p5 = por %p892_p2, %p69_p13  ;;  %s57_s8 = ssub.s32 %s822_s16, %s1089_s5 }
  0x16   : > { %p605_p7 = scmp.lt.s32.totalorder %s826_s17, 2  ;;  %p60_p9 = scmp.eq.s32.totalorder %s57_s8, 0 }
  0x17   : > { %s165_s9 = sand.u32 1, %s814_s14   ;;  %s582_s18 = smul.u32 288, %s822_s16 }
  0x18   : > { %s581_s10 = smul.u32 288, %s165_s9  ;;  %p597_p10 = pnand %p605_p7, %p71_p3 }
  0x19   : > { %s941_s11 = scalar_select %p60_p9, %s814_s14, %s62_s6  }
  0x1a   : > { %s169_s19 = scalar_lea.vmem [#allocation5], %s581_s10  ;;  %s176_s28 = scalar_lea.hbm %s1074_s1, %s582_s18 }
  0x1b   : > { %s179_s24 = sshll.u32 %s169_s19, 4  ;;  %s177_s21 = sshll.u32 %s176_s28, 4  ;;  %s180_s24 = int_to_ptr.vmem [resolvable:$true] %s179_s24  ;;  %s178_s21 = int_to_ptr.hbm [resolvable:$true] %s177_s21 }
  0x1c   : > { %s166_s29 = scalar_lea.sflag [#allocation6], %s165_s9  ;;  %191 = sbr.rel (%p911_p8) target bundleno = 242 (0xf2), region = 32 }
  0x1d   : > { %599 = dma.hbm_to_vmem [thread:$0]  (!%p597_p10), %s178_s21, 4608, %s180_s24, %s166_s29, %s829_s30, %s829_s30, %s830_s4  }
  0x21   : > { %793 = dma.done.wait (%p888_p1), [#allocation3], 1024  }
  0x22   : > { %795 = vsyncadd (%p888_p1), [#allocation3], 4294966272  ;;  %s957_s6 = sand.u32 1, %s810_s13  }
  0x23   : > { %s583_s8 = smul.u32 288, %s957_s6  ;;  %s199_s9 = scalar_lea.sflag [#allocation6], %s957_s6 }
  0x25   : > { %s961_s10 = scalar_lea.vmem [#allocation5], %s583_s8 }
  0x26   : > { %797 = dma.done.wait (%p898_p4), %s199_s9, 4608  }
  0x27   : > { %799 = vsyncadd (%p898_p4), %s199_s9, 4294962688  ;;  %v266_v0 = vld [vmem:[%s961_s10 + $0xf0] sm:$0xff]  ;;  %v267_v1 = vld [vmem:[%s961_s10 + $0xf8] sm:$0xff]  ;;  %v831_v15 = vmov 0   ;;  %vm296_vm0 = vcmask 130048   ;;  %s566_s25 = sshll.u32 %s957_s6, 6 }
  0x28   : > { %v264_v2 = vld [vmem:[%s961_s10 + $0xe0] sm:$0xff]  ;;  %309 = vmatpush.msra.mxu0 %v266_v0  ;;  %367 = vmatpush.msra.mxu2 %v267_v1  ;;  %v265_v3 = vld [vmem:[%s961_s10 + $0xe8] sm:$0xff]  ;;  %v262_v4 = vld [vmem:[%s961_s10 + $0xd0] sm:$0xff]  ;;  %s1024_s26 = scalar_lea.vmem [#allocation7], %s566_s25  ;;  %s580_s28 = sshll.u32 %s818_s15, 6 }
  0x29   : > { %v263_v5 = vld [vmem:[%s961_s10 + $0xd8] sm:$0xff]  ;;  %v260_v6 = vld [vmem:[%s961_s10 + $0xc0] sm:$0xff]  ;;  %v261_v7 = vld [vmem:[%s961_s10 + $0xc8] sm:$0xff]  ;;  %662 = vset.pattern.permute.xlu0 %v831_v15  ;;  %663 = vset.pattern.permute.xlu1 %v831_v15  ;;  %s455_s8 = scalar_lea.hbm %s1076_s3, %s580_s28  ;;  %s456_s9 = sshll.u32 %s1024_s26, 4  ;;  %s457_s9 = int_to_ptr.vmem [resolvable:$true] %s456_s9 }
  0x2a   : > { %310 = vmatpush.msra.mxu0 %v264_v2  ;;  %368 = vmatpush.msra.mxu2 %v265_v3  ;;  %v258_v8 = vld [vmem:[%s961_s10 + $0xb0] sm:$0xff]  ;;  %v259_v9 = vld [vmem:[%s961_s10 + $0xb8] sm:$0xff]  ;;  %v256_v10 = vld [vmem:[%s961_s10 + $0xa0] sm:$0xff]  ;;  %s442_s20 = scalar_lea.sflag [#allocation4], %s957_s6  ;;  %s760_s4 = scalar_lea.hbm %s1076_s3, 128 }
  0x2b   : > { %v257_v11 = vld [vmem:[%s961_s10 + $0xa8] sm:$0xff]  ;;  %v254_v12 = vld [vmem:[%s961_s10 + $0x90] sm:$0xff]  ;;  %v255_v13 = vld [vmem:[%s961_s10 + $0x98] sm:$0xff] }
  0x2c   : > { %311 = vmatpush.msra.mxu0 %v262_v4  ;;  %369 = vmatpush.msra.mxu2 %v263_v5  ;;  %v270_v14 = vld [vmem:[%s961_s10 + $0x110] sm:$0xff]  ;;  %v271_v16 = vld [vmem:[%s961_s10 + $0x118] sm:$0xff]  ;;  %v268_v17 = vld [vmem:[%s961_s10 + $0x100] sm:$0xff] }
  0x2d   : > { %v252_v18 = vld [vmem:[%s961_s10 + $0x80] sm:$0xff]  ;;  %v253_v19 = vld [vmem:[%s961_s10 + $0x88] sm:$0xff]  ;;  %352 = vmatpush.msra.mxu1 %v270_v14  ;;  %410 = vmatpush.msra.mxu3 %v271_v16  ;;  %v250_v22 = vld [vmem:[%s961_s10 + $0x70] sm:$0xff] }
  0x2e   : > { %312 = vmatpush.msra.mxu0 %v260_v6  ;;  %370 = vmatpush.msra.mxu2 %v261_v7  ;;  %v269_v20 = vld [vmem:[%s961_s10 + $0x108] sm:$0xff]  ;;  %v251_v23 = vld [vmem:[%s961_s10 + $0x78] sm:$0xff]  ;;  %v248_v24 = vld [vmem:[%s961_s10 + $0x60] sm:$0xff] }
  0x2f   : > { %v229_v21 = vld [vmem:[#allocation2 + $0x8] sm:$0xff]  ;;  %353 = vmatpush.msra.mxu1 %v268_v17  ;;  %411 = vmatpush.msra.mxu3 %v269_v20  ;;  %v272_v26 = vld [vmem:[%s1075_s2] sm:$0xff]  ;;  %v246_v27 = vld [vmem:[%s961_s10 + $0x50] sm:$0xff] }
  0x30   : > { %313 = vmatpush.msra.mxu0 %v258_v8  ;;  %371 = vmatpush.msra.mxu2 %v259_v9  ;;  %v249_v25 = vld [vmem:[%s961_s10 + $0x68] sm:$0xff]  ;;  %v247_v28 = vld [vmem:[%s961_s10 + $0x58] sm:$0xff]  ;;  %v244_v29 = vld [vmem:[%s961_s10 + $0x40] sm:$0xff] }
  0x31   : > { %567 = vmatmul.msk.f32.vlgmr.msra.gmra.mxu1 %vm296_vm0, %v229_v21  ;;  %571 = vmatmul.msk.f32.vlgmr.msra.gmra.mxu3 %vm296_vm0, %v229_v21  ;;  %v245_v30 = vld [vmem:[%s961_s10 + $0x48] sm:$0xff]  ;;  %v231_v31 = vld [vmem:[#allocation2 + $0x18] sm:$0xff]  ;;  %v242_v32 = vld [vmem:[%s961_s10 + $0x30] sm:$0xff] }
  0x32   : > { %314 = vmatpush.msra.mxu0 %v256_v10  ;;  %372 = vmatpush.msra.mxu2 %v257_v11  ;;  %v243_v33 = vld [vmem:[%s961_s10 + $0x38] sm:$0xff]  ;;  %v240_v34 = vld [vmem:[%s961_s10 + $0x20] sm:$0xff]  ;;  %v241_v35 = vld [vmem:[%s961_s10 + $0x28] sm:$0xff] }
  0x33   : > { %278 = vperm.xlu0 %662, %v272_v26   ;;  %v274_v36 = vld [vmem:[%s1075_s2 + $0x10] sm:$0xff]  ;;  %v273_v37 = vld [vmem:[%s1075_s2 + $0x8] sm:$0xff]  ;;  %v239_v39 = vld [vmem:[%s961_s10 + $0x18] sm:$0xff] }
  0x34   : > { %315 = vmatpush.msra.mxu0 %v254_v12  ;;  %373 = vmatpush.msra.mxu2 %v255_v13  ;;  %v238_v38 = vld [vmem:[%s961_s10 + $0x10] sm:$0xff]  ;;  %v236_v40 = vld [vmem:[%s961_s10] sm:$0xff]  ;;  %v237_v41 = vld [vmem:[%s961_s10 + $0x8] sm:$0xff]  ;;  %s458_s10 = sshll.u32 %s455_s8, 4  ;;  %s459_s10 = int_to_ptr.hbm [resolvable:$true] %s458_s10 }
  0x35   : > { %288 = vperm.xlu1 %663, %v274_v36   ;;  %v228_v42 = vld [vmem:[#allocation2] sm:$0xff]  ;;  %v233_v43 = vld [vmem:[#allocation2 + $0x28] sm:$0xff]  ;;  %v275_v44 = vld [vmem:[%s1075_s2 + $0x18] sm:$0xff]  ;;  %s754_s15 = sshra.s32 %s459_s10, 4  ;;  %s755_s15 = int_to_ptr.hbm [resolvable:$true] %s754_s15 }
  0x36   : > { %316 = vmatpush.msra.mxu0 %v252_v18  ;;  %374 = vmatpush.msra.mxu2 %v253_v19  ;;  %v230_v45 = vld [vmem:[#allocation2 + $0x10] sm:$0xff]  ;;  %v235_v46 = vld [vmem:[#allocation2 + $0x38] sm:$0xff]  ;;  %v232_v47 = vld [vmem:[#allocation2 + $0x20] sm:$0xff]  ;;  %s756_s22 = scalar_lea.hbm %s755_s15, 64  ;;  %p761_p8 = scmp.lt.s32.totalorder %s755_s15, %s1076_s3 }
  0x37   : > { %v234_v48 = vld [vmem:[#allocation2 + $0x30] sm:$0xff]  ;;  %p757_p1 = scmp.ne.s32.totalorder %s755_s15, %s756_s22  ;;  %p762_p12 = scmp.lt.s32.totalorder %s760_s4, %s756_s22 }
  0x38   : > { %317 = vmatpush.msra.mxu0 %v250_v22  ;;  %375 = vmatpush.msra.mxu2 %v251_v23 }
  0x39   : > { %568 = vmatmul.msk.f32.gmra.mxu1 %vm296_vm0, %v231_v31  ;;  %572 = vmatmul.msk.f32.gmra.mxu3 %vm296_vm0, %v231_v31  ;;  %p758_p2 = pnand %p757_p1, %p932_p5  ;;  %p763_p13 = por %p762_p12, %p761_p8 }
  0x3a   : > { %318 = vmatpush.msra.mxu0 %v248_v24  ;;  %376 = vmatpush.msra.mxu2 %v249_v25 }
  0x3b   : > { %283 = vperm.xlu0 %662, %v273_v37   ;;  %p759_p4 = pneg %p758_p2 }
  0x3c   : > { %319 = vmatpush.msra.mxu0 %v246_v27  ;;  %377 = vmatpush.msra.mxu2 %v247_v28 }
  0x3d   : > { %293 = vperm.xlu1 %663, %v275_v44   ;;  %p764_p0 = pnand %p763_p13, %p759_p4 }
  0x3e   : > { %320 = vmatpush.msra.mxu0 %v244_v29  ;;  %378 = vmatpush.msra.mxu2 %v245_v30 }
  0x40   : > { %321 = vmatpush.msra.mxu0 %v242_v32  ;;  %379 = vmatpush.msra.mxu2 %v243_v33 }
  0x41   : > { %569 = vmatmul.msk.f32.gmra.mxu1 %vm296_vm0, %v233_v43  ;;  %573 = vmatmul.msk.f32.gmra.mxu3 %vm296_vm0, %v233_v43 }
  0x42   : > { %322 = vmatpush.msra.mxu0 %v240_v34  ;;  %380 = vmatpush.msra.mxu2 %v241_v35 }
  0x44   : > { %323 = vmatpush.msra.mxu0 %v238_v38  ;;  %381 = vmatpush.msra.mxu2 %v239_v39 }
  0x46   : > { %324 = vmatpush.msra.mxu0 %v236_v40  ;;  %382 = vmatpush.msra.mxu2 %v237_v41 }
  0x47   : > { %325 = vmatmul.f32.vlgmr.msra.gmra.mxu0 %v228_v42  ;;  %383 = vmatmul.f32.vlgmr.msra.gmra.mxu2 %v228_v42 }
  0x49   : > { %570 = vmatmul.msk.f32.gmra.mxu1 %vm296_vm0, %v235_v46  ;;  %574 = vmatmul.msk.f32.gmra.mxu3 %vm296_vm0, %v235_v46 }
  0x4f   : > { %328 = vmatmul.f32.gmra.mxu0 %v230_v45  ;;  %386 = vmatmul.f32.gmra.mxu2 %v230_v45 }
  0x57   : > { %331 = vmatmul.f32.gmra.mxu0 %v232_v47  ;;  %389 = vmatmul.f32.gmra.mxu2 %v232_v47 }
  0x5f   : > { %334 = vmatmul.f32.gmra.mxu0 %v234_v48  ;;  %392 = vmatmul.f32.gmra.mxu2 %v234_v48 }
  0xa5   : > { %v279_v50 = vpop.permute.xlu0 %278 }
  0xa7   : > { %v289_v1 = vpop.permute.xlu1 %288 }
  0xad   : > { %v284_v57 = vpop.permute.xlu0 %283 }
  0xae   : > { %v355_v49 = vpop.f32.mrf.mxu1 }
  0xaf   : > { %v294_v13 = vpop.permute.xlu1 %293 }
  0xb4   : > { %v413_v52 = vpop.f32.mrf.mxu3 }
  0xb6   : > { %v358_v55 = vpop.f32.mrf.mxu1 }
  0xbc   : > { %v416_v62 = vpop.f32.mrf.mxu3 }
  0xbe   : > { %v361_v3 = vpop.f32.mrf.mxu1 }
  0xc4   : > { %v326_v51 = vpop.f32.mrf.mxu0  ;;  %v419_v11 = vpop.f32.mrf.mxu3 }
  0xc5   : > { %v327_v53 = vadd.f32 %v326_v51, %v279_v50 }
  0xc6   : > { %v364_v16 = vpop.f32.mrf.mxu1 }
  0xc7   : > { %v356_v54 = vadd.f32 %v355_v49, %v327_v53 }
  0xc9   : > { %664 = vtanh.f32 %v356_v54 }
  0xca   : > { %v384_v56 = vpop.f32.mrf.mxu2 }
  0xcb   : > { %v385_v58 = vadd.f32 %v384_v56, %v279_v50 }
  0xcc   : > { %v329_v59 = vpop.f32.mrf.mxu0  ;;  %v422_v23 = vpop.f32.mrf.mxu3 }
  0xcd   : > { %v414_v60 = vadd.f32 %v413_v52, %v385_v58  ;;  %v330_v61 = vadd.f32 %v329_v59, %v284_v57 }
  0xcf   : > { %v665_v63 = vpop.eup %664  ;;  %666 = vtanh.f32 %v414_v60  ;;  %v359_v0 = vadd.f32 %v358_v55, %v330_v61 }
  0xd0   : > { %433 = vst [vmem:[%s1024_s26] sm:$0xff] %v665_v63 }
  0xd1   : > { %668 = vtanh.f32 %v359_v0 }
  0xd2   : > { %v387_v2 = vpop.f32.mrf.mxu2 }
  0xd3   : > { %v388_v4 = vadd.f32 %v387_v2, %v284_v57 }
  0xd4   : > { %v332_v5 = vpop.f32.mrf.mxu0 }
  0xd5   : > { %v667_v6 = vpop.eup %666  ;;  %v333_v7 = vadd.f32 %v332_v5, %v289_v1  ;;  %v417_v8 = vadd.f32 %v416_v62, %v388_v4 }
  0xd6   : > { %434 = vst [vmem:[%s1024_s26 + $0x8] sm:$0xff] %v667_v6 }
  0xd7   : > { %v669_v9 = vpop.eup %668  ;;  %670 = vtanh.f32 %v417_v8  ;;  %v362_v10 = vadd.f32 %v361_v3, %v333_v7 }
  0xd8   : > { %435 = vst [vmem:[%s1024_s26 + $0x10] sm:$0xff] %v669_v9 }
  0xd9   : > { %672 = vtanh.f32 %v362_v10 }
  0xda   : > { %v390_v12 = vpop.f32.mrf.mxu2 }
  0xdb   : > { %v391_v14 = vadd.f32 %v390_v12, %v289_v1 }
  0xdc   : > { %v335_v15 = vpop.f32.mrf.mxu0 }
  0xdd   : > { %v671_v17 = vpop.eup %670  ;;  %v336_v18 = vadd.f32 %v335_v15, %v294_v13  ;;  %v420_v19 = vadd.f32 %v419_v11, %v391_v14 }
  0xde   : > { %436 = vst [vmem:[%s1024_s26 + $0x18] sm:$0xff] %v671_v17 }
  0xdf   : > { %v673_v20 = vpop.eup %672  ;;  %674 = vtanh.f32 %v420_v19  ;;  %v365_v21 = vadd.f32 %v364_v16, %v336_v18 }
  0xe0   : > { %437 = vst [vmem:[%s1024_s26 + $0x20] sm:$0xff] %v673_v20 }
  0xe1   : > { %676 = vtanh.f32 %v365_v21 }
  0xe2   : > { %v393_v22 = vpop.f32.mrf.mxu2 }
  0xe3   : > { %v394_v24 = vadd.f32 %v393_v22, %v294_v13 }
  0xe5   : > { %v675_v25 = vpop.eup %674  ;;  %v423_v26 = vadd.f32 %v422_v23, %v394_v24 }
  0xe6   : > { %438 = vst [vmem:[%s1024_s26 + $0x28] sm:$0xff] %v675_v25 }
  0xe7   : > { %v677_v27 = vpop.eup %676  ;;  %678 = vtanh.f32 %v423_v26 }
  0xe8   : > { %439 = vst [vmem:[%s1024_s26 + $0x30] sm:$0xff] %v677_v27 }
  0xed   : > { %v679_v28 = vpop.eup %678 }
  0xee   : > { %440 = vst [vmem:[%s1024_s26 + $0x38] sm:$0xff] %v679_v28 }
  0xef   : > { %767 = shalt.err (!%p764_p0)
}
  0xf0   : > { %s832_s6 = smov 256   ;;  %s833_s24 = smov 16  }
  0xf1   : > { %590 = dma.vmem_to_hbm [thread:$0]  (%p932_p5), %s457_s9, 1024, %s459_s10, %s442_s20, %s832_s6, %s832_s6, %s833_s24  }
  0xf2 PF: > { %s473_s25 = sand.u32 1, %s806_s12   ;;  %p601_p3 = pnand %p562_p11, %p903_p6 }
  0xf3   : > { %s474_s26 = scalar_lea.sflag [#allocation4], %s473_s25 }
  0xf4   : > { %p602_p7 = pneg %p601_p3 }
  0xf6   : > { %801 = dma.done.wait (%p602_p7), %s474_s26, 1024  }
  0xf7   : > { %803 = vsyncadd (%p602_p7), %s474_s26, 4294966272  ;;  %s20_s17 = sadd.s32 1, %s826_s17   ;;  %s1083_s12 = smov %s810_s13 }
  0xf8   : > { %p17_p9 = scmp.ge.s32.totalorder %s20_s17, 4   ;;  %s1084_s13 = smov %s814_s14 }
  0xf9   : > { %s1085_s14 = smov %s941_s11  ;;  %s1086_s15 = smov %s822_s16 }
  0xfa   : > { %s1087_s16 = smov %s1089_s5  ;;  %19 = sbr.rel (!%p17_p9) target bundleno = 7 (0x7), region = 82 }
  0xff   :  { %480 = vsyncpa [#allocation3], 1 }
 0x100   :  { %482 = vsyncpa [#allocation3 + $0x1], 1 }
 0x101   :  { %483 = vsyncpa [#allocation6], 1 }
 0x102   :  { %485 = vsyncpa [#allocation6 + $0x1], 1 }
 0x103   :  { %486 = vsyncpa [#allocation4], 1 }
 0x104   :  { %488 = vsyncpa [#allocation4 + $0x1], 1 }

</bundles_post_ra>
